<compile_context>
chip_gen: v7x
topology: tpu7x:2x2x1
jax: 0.10.0
libtpu: 0.0.40
codegen_flags: <defaults>
</compile_context>

<pallas_src>
import math
from functools import partial

import jax
import jax.numpy as jnp
from jax import lax
from jax.experimental import pallas as pl
from jax.experimental.pallas import tpu as pltpu


def _round_up(a, b):
    return (a + b - 1) // b * b


# --------------------------------------------------------------------------
# Kernels
# --------------------------------------------------------------------------

def _fr_kernel_resident(x_ref, w_ref, b_ref, o_ref):
    """W fully resident in VMEM; single K span -> no accumulator, no branches."""
    acc = lax.dot_general(
        x_ref[...], w_ref[...],
        dimension_numbers=(((1,), (1,)), ((), ())),   # x @ W.T, no materialized .T
        preferred_element_type=jnp.float32,
    )
    o_ref[...] = (acc + b_ref[...].astype(jnp.float32)).astype(o_ref.dtype)


def _fr_kernel_tiled(x_ref, w_ref, b_ref, o_ref, acc_ref):
    """Large-D fallback: (i, j, k) grid with an f32 VMEM accumulator."""
    k = pl.program_id(2)

    @pl.when(k == 0)
    def _init():
        acc_ref[...] = jnp.zeros_like(acc_ref)

    acc_ref[...] += lax.dot_general(
        x_ref[...], w_ref[...],
        dimension_numbers=(((1,), (1,)), ((), ())),
        preferred_element_type=jnp.float32,
    )

    @pl.when(k == pl.num_programs(2) - 1)
    def _finalize():
        o_ref[...] = (acc_ref[...] + b_ref[...].astype(jnp.float32)).astype(o_ref.dtype)


# --------------------------------------------------------------------------
# Wrapper
# --------------------------------------------------------------------------

def feature_regression(x, W, b, *, tm_max=512, tn_max=512, tk_max=512,
                       mxu_dtype=None, vmem_budget_bytes=40 * 1024 * 1024):
    """z = x @ (W * (1 - eye)).T + b  via a Pallas TPU kernel.

    x: [B, D], W: [D, D] (out, in), b: [D].  Flatten any leading dims of x into
    B before calling (one call for all timesteps).
    """
    B, D = x.shape
    assert W.shape == (D, D) and b.shape == (D,)
    out_dtype = x.dtype

    # One-time XLA preprocessing: zero W's diagonal (fuses with the pad below).
    idx = jnp.arange(D)
    Wm = W.at[idx, idx].set(0)

    op_dtype = mxu_dtype if mxu_dtype is not None else x.dtype
    sub = 16 if jnp.dtype(op_dtype).itemsize == 2 else 8   # bf16 min tile (16,128)

    # Lane-dense padding: D -> multiple of 128.
    Dp = _round_up(D, 128)

    # M tiling: grow toward tm_max (amortize per-step overhead), but keep >= 2
    # M tiles for large batches so both v7x TensorCores get work.
    tm = min(tm_max, _round_up(B, sub))
    if B >= 512 and _round_up(B, tm) // tm < 2:
        tm = _round_up((B + 1) // 2, sub)
    Bp = _round_up(B, tm)

    pad_b, pad_d = Bp - B, Dp - D
    xp = jnp.pad(x, ((0, pad_b), (0, pad_d))) if (pad_b or pad_d) else x
    Wp = jnp.pad(Wm, ((0, pad_d), (0, pad_d))) if pad_d else Wm
    bp = jnp.pad(b.reshape(1, D), ((0, 0), (0, pad_d))) if pad_d else b.reshape(1, D)

    # Reduced-precision operands at the HBM boundary (f32 accumulation kept).
    if mxu_dtype is not None:
        xp = xp.astype(mxu_dtype)
        Wp = Wp.astype(mxu_dtype)

    xsz = jnp.dtype(xp.dtype).itemsize
    wsz = jnp.dtype(Wp.dtype).itemsize
    osz = jnp.dtype(out_dtype).itemsize
    bsz = jnp.dtype(bp.dtype).itemsize

    cost = pl.CostEstimate(
        flops=2 * Bp * Dp * Dp,
        transcendentals=0,
        bytes_accessed=Bp * Dp * xsz + Dp * Dp * wsz + Bp * Dp * osz + Dp * bsz,
    )

    # Working-set estimate for the resident-W path (conservatively 2x-buffered).
    resident_bytes = (2 * tm * Dp * xsz + 2 * Dp * Dp * wsz
                      + 2 * tm * Dp * osz + 2 * Dp * bsz)

    if resident_bytes <= vmem_budget_bytes:
        # ---- W fully resident in VMEM, grid over M tiles only ----
        vmem_limit = int(min(max(resident_bytes + (4 << 20), 32 << 20), 48 << 20))
        out = pl.pallas_call(
            _fr_kernel_resident,
            out_shape=jax.ShapeDtypeStruct((Bp, Dp), out_dtype),
            grid=(Bp // tm,),
            in_specs=[
                pl.BlockSpec((tm, Dp), lambda i: (i, 0)),   # x: streamed over M
                pl.BlockSpec((Dp, Dp), lambda i: (0, 0)),   # W: resident, DMA'd once
                pl.BlockSpec((1, Dp), lambda i: (0, 0)),    # bias: resident
            ],
            out_specs=pl.BlockSpec((tm, Dp), lambda i: (i, 0)),
            compiler_params=pltpu.CompilerParams(
                dimension_semantics=("parallel",),
                vmem_limit_bytes=vmem_limit,
            ),
            cost_estimate=cost,
        )(xp, Wp, bp)
    else:
        # ---- Large-D fallback: independent N / K tiling (no diag coupling) ----
        tn = min(tn_max, Dp)
        tk = min(tk_max, Dp)
        lcm = tn * tk // math.gcd(tn, tk)
        Dp_t = _round_up(Dp, lcm)
        if Dp_t != Dp:
            extra = Dp_t - Dp
            xp = jnp.pad(xp, ((0, 0), (0, extra)))
            Wp = jnp.pad(Wp, ((0, extra), (0, extra)))
            bp = jnp.pad(bp, ((0, 0), (0, extra)))
            Dp = Dp_t

        tiled_bytes = (2 * tm * tk * xsz + 2 * tn * tk * wsz
                       + 2 * tm * tn * osz + tm * tn * 4 + 2 * tn * bsz)
        vmem_limit = int(min(max(tiled_bytes + (4 << 20), 32 << 20), 48 << 20))

        out = pl.pallas_call(
            _fr_kernel_tiled,
            out_shape=jax.ShapeDtypeStruct((Bp, Dp), out_dtype),
            grid=(Bp // tm, Dp // tn, Dp // tk),
            in_specs=[
                pl.BlockSpec((tm, tk), lambda i, j, k: (i, k)),   # x     (K tile)
                pl.BlockSpec((tn, tk), lambda i, j, k: (j, k)),   # W [out, in]
                pl.BlockSpec((1, tn), lambda i, j, k: (0, j)),    # bias
            ],
            out_specs=pl.BlockSpec((tm, tn), lambda i, j, k: (i, j)),
            scratch_shapes=[pltpu.VMEM((tm, tn), jnp.float32)],
            compiler_params=pltpu.CompilerParams(
                dimension_semantics=("parallel", "parallel", "arbitrary"),
                vmem_limit_bytes=vmem_limit,
            ),
            cost_estimate=cost,
        )(xp, Wp, bp)

    return out[:B, :D] if (out.shape != (B, D)) else out


# --------------------------------------------------------------------------
# Parameter init + pure-JAX reference (mirrors FeatureRegression)
# --------------------------------------------------------------------------

def init_feature_regression_params(key, input_size, dtype=jnp.float32):
    """Deterministic init mirroring FeatureRegression.reset_parameters()."""
    stdv = 1.0 / math.sqrt(input_size)
    k_w, k_b = jax.random.split(key)
    W = jax.random.uniform(
        k_w, (input_size, input_size), dtype=dtype, minval=-stdv, maxval=stdv
    )
    b = jax.random.uniform(
        k_b, (input_size,), dtype=dtype, minval=-stdv, maxval=stdv
    )
    return W, b


def _reference(x, W, b):
    D = W.shape[0]
    m = jnp.ones((D, D), dtype=W.dtype) - jnp.eye(D, dtype=W.dtype)
    return x @ (W * m).T + b


if __name__ == "__main__":
    key = jax.random.PRNGKey(0)
    k_x1, k_p1, k_x2, k_p2, k_x3, k_p3 = jax.random.split(key, 6)

    # Case 1: per-timestep BRITS shape (batch=16, input_size=32), f32.
    B1, D1 = 16, 32
    x1 = jax.random.normal(k_x1, (B1, D1), dtype=jnp.float32)
    W1, b1 = init_feature_regression_params(k_p1, D1)
    z1 = jax.block_until_ready(feature_regression(x1, W1, b1))
    assert z1.shape == (B1, D1)
    assert jnp.allclose(z1, _reference(x1, W1, b1), atol=1e-4, rtol=1e-4)

    # Case 2: non-aligned shapes (exercises lane/sublane padding), e.g. all
    # timesteps of a short sequence batched into one call: (3*3, 40).
    B2, D2 = 9, 40
    x2 = jax.random.normal(k_x2, (B2, D2), dtype=jnp.float32)
    W2, b2 = init_feature_regression_params(k_p2, D2)
    z2 = jax.block_until_ready(feature_regression(x2, W2, b2))
    assert z2.shape == (B2, D2)
    assert jnp.allclose(z2, _reference(x2, W2, b2), atol=1e-4, rtol=1e-4)

    # Case 3: bf16 operands streamed from HBM (f32 accumulation).  The diagonal
    # is masked in the wrapper, so no bf16/f32 cancellation residual remains.
    B3, D3 = 64, 48
    x3 = jax.random.normal(k_x3, (B3, D3), dtype=jnp.float32)
    W3, b3 = init_feature_regression_params(k_p3, D3)
    z3 = jax.block_until_ready(
        feature_regression(x3, W3, b3, mxu_dtype=jnp.bfloat16))
    assert z3.shape == (B3, D3)
    ref3 = _reference(x3.astype(jnp.bfloat16).astype(jnp.float32),
                      W3.astype(jnp.bfloat16).astype(jnp.float32), b3)
    assert jnp.allclose(z3, ref3, atol=5e-2, rtol=5e-2)

    print("KERNEL_OK")
</pallas_src>

<mosaic_0001>
module attributes {stable_mosaic.version = 11 : i64} {
  func.func @_fr_kernel_resident(%arg0: i32, %arg1: memref<16x128xf32, #tpu.memory_space<vmem>>, %arg2: memref<128x128xf32, #tpu.memory_space<vmem>>, %arg3: memref<1x128xf32, #tpu.memory_space<vmem>>, %arg4: memref<16x128xf32, #tpu.memory_space<vmem>>) attributes {dimension_semantics = [#tpu.dimension_semantics<parallel>], iteration_bounds = array<i64: 1>, scalar_prefetch = 0 : i64, scratch_operands = 0 : i64, tpu.core_type = #tpu.core_type<tc>, window_params = [{transform_indices = @transform_0, window_bounds = array<i64: 16, 128>}, {pipeline_mode = #tpu.pipeline_mode<synchronous>, transform_indices = @transform_1, window_bounds = array<i64: 128, 128>}, {pipeline_mode = #tpu.pipeline_mode<synchronous>, transform_indices = @transform_2, window_bounds = array<i64: 1, 128>}, {transform_indices = @transform_3, window_bounds = array<i64: 16, 128>}]} {
    %c0 = arith.constant 0 : index
    %c0_0 = arith.constant 0 : index
    %0 = vector.load %arg1[%c0, %c0_0] : memref<16x128xf32, #tpu.memory_space<vmem>>, vector<16x128xf32>
    %c0_1 = arith.constant 0 : index
    %c0_2 = arith.constant 0 : index
    %1 = vector.load %arg2[%c0_1, %c0_2] : memref<128x128xf32, #tpu.memory_space<vmem>>, vector<128x128xf32>
    %cst = arith.constant dense<0.000000e+00> : vector<16x128xf32>
    %2 = tpu.matmul %0, %1, %cst {dimension_numbers = #tpu.dot_dimension_numbers<[1], [1], [0], [0], [0, 0, 1, 0], [], []>} : vector<16x128xf32>, vector<128x128xf32>, vector<16x128xf32> -> vector<16x128xf32>
    %c0_3 = arith.constant 0 : index
    %c0_4 = arith.constant 0 : index
    %3 = vector.load %arg3[%c0_3, %c0_4] : memref<1x128xf32, #tpu.memory_space<vmem>>, vector<1x128xf32>
    %4 = vector.broadcast %3 : vector<1x128xf32> to vector<16x128xf32>
    %5 = arith.addf %2, %4 : vector<16x128xf32>
    %c0_5 = arith.constant 0 : index
    %c0_6 = arith.constant 0 : index
    %6 = vector.load %arg4[%c0_5, %c0_6] : memref<16x128xf32, #tpu.memory_space<vmem>>, vector<16x128xf32>
    tpu.vector_store %arg4[%c0_5, %c0_6], %5 {strides = array<i32>} : memref<16x128xf32, #tpu.memory_space<vmem>>, vector<16x128xf32>,
    return
  }
  func.func @transform_0(%arg0: i32) -> (i32, i32) {
    %c0_i32 = arith.constant 0 : i32
    %c0_i32_0 = arith.constant 0 : i32
    return %arg0, %c0_i32 : i32, i32
  }
  func.func @transform_1(%arg0: i32) -> (i32, i32) {
    %c0_i32 = arith.constant 0 : i32
    %c0_i32_0 = arith.constant 0 : i32
    %c0_i32_1 = arith.constant 0 : i32
    return %c0_i32, %c0_i32_0 : i32, i32
  }
  func.func @transform_2(%arg0: i32) -> (i32, i32) {
    %c0_i32 = arith.constant 0 : i32
    %c0_i32_0 = arith.constant 0 : i32
    %c0_i32_1 = arith.constant 0 : i32
    return %c0_i32, %c0_i32_0 : i32, i32
  }
  func.func @transform_3(%arg0: i32) -> (i32, i32) {
    %c0_i32 = arith.constant 0 : i32
    %c0_i32_0 = arith.constant 0 : i32
    return %arg0, %c0_i32 : i32, i32
  }
}

</mosaic_0001>

<bundles_post_ra>
// kernel: tpu_custom_call.1
= control target key start
LH: loop header
LB: loop body
LE: loop exit
PB: predicated region body
PF: predicated region fallthrough
CT: control target
= control target key end

     0   :  { %8 = vsyncpa [#allocation3], 0  ;;  %s399_s0 = inlined_call_operand.hbm [shape: f32[16,128], index: 0, kind: input, shape index: {}]   ;;  %s400_s1 = inlined_call_operand.hbm [shape: f32[128,128], index: 1, kind: input, shape index: {}]   ;;  %s401_s2 = inlined_call_operand.vmem [shape: f32[1,128], index: 2, kind: input, shape index: {}]   ;;  %s402_s3 = inlined_call_operand.hbm [shape: f32[16,128], index: 3, kind: output, shape index: {}]  }
   0x1   :  { %9 = vsyncpa [#allocation6], 0 }
   0x2   :  { %10 = vsyncpa [#allocation4], 0  ;;  %s326_s12 = smov [#allocation2]   ;;  %s254_s16 = scalar_lea.hbm %s399_s0, 256 }
   0x3   :  { %s16_s13 = sshll.u32 %s326_s12, 4  ;;  %p255_p0 = scmp.ne.s32.totalorder %s399_s0, %s254_s16  ;;  %s17_s13 = int_to_ptr.vmem [resolvable:$true] %s16_s13 }
   0x4   :  { %p258_p1 = scmp.lt.u32.totalorder %s254_s16, %s399_s0 }
   0x6   :  { %p260_p2 = pnand %p258_p1, %p255_p0 }
   0x8   :  { %263 = shalt.err (!%p260_p2)
}
   0x9   :  { %s264_s21 = scalar_lea.vmem %s17_s13, 256  ;;  %p269_p4 = scmp.lt.s32.totalorder %s17_s13, %s17_s13 }
   0xa   :  { %p265_p3 = scmp.ne.s32.totalorder %s17_s13, %s264_s21  ;;  %p270_p5 = scmp.lt.s32.totalorder %s264_s21, %s264_s21 }
   0xc   :  { %p271_p6 = por %p270_p5, %p269_p4 }
   0xe   :  { %p272_p7 = pnand %p271_p6, %p265_p3 }
  0x10   :  { %275 = shalt.err (!%p272_p7)
}
  0x11   :  { %s327_s22 = smov 128   ;;  %s328_s23 = smov 8  }
  0x12   :  { %22 = dma.hbm_to_vmem [thread:$0]  %s399_s0, 256, %s17_s13, [#allocation3], %s327_s22, %s327_s22, %s328_s23  }
  0x13   :  { %s329_s26 = smov [#allocation5]   ;;  %s276_s30 = scalar_lea.hbm %s400_s1, 2048 }
  0x14   :  { %s28_s27 = sshll.u32 %s329_s26, 4  ;;  %p277_p8 = scmp.ne.s32.totalorder %s400_s1, %s276_s30  ;;  %s29_s27 = int_to_ptr.vmem [resolvable:$true] %s28_s27 }
  0x15   :  { %p280_p9 = scmp.lt.u32.totalorder %s276_s30, %s400_s1 }
  0x17   :  { %p282_p10 = pnand %p280_p9, %p277_p8 }
  0x19   :  { %285 = shalt.err (!%p282_p10)
}
  0x1a   :  { %s286_s8 = scalar_lea.vmem %s29_s27, 2048  ;;  %p291_p12 = scmp.lt.s32.totalorder %s29_s27, %s29_s27 }
  0x1b   :  { %p287_p11 = scmp.ne.s32.totalorder %s29_s27, %s286_s8  ;;  %p292_p13 = scmp.lt.s32.totalorder %s286_s8, %s286_s8 }
  0x1d   :  { %p293_p0 = por %p292_p13, %p291_p12 }
  0x1f   :  { %p294_p1 = pnand %p293_p0, %p287_p11 }
  0x21   :  { %297 = shalt.err (!%p294_p1)
}
  0x22   :  { %34 = dma.hbm_to_vmem [thread:$0]  %s400_s1, 2048, %s29_s27, [#allocation6], %s327_s22, %s327_s22, %s328_s23  }
  0x23   :  { %320 = dma.done.wait [#allocation3], 256  }
  0x24   :  { %321 = vsyncadd [#allocation3], 4294967040 }
  0x25   :  { %322 = dma.done.wait [#allocation6], 2048  }
  0x26   :  { %323 = vsyncadd [#allocation6], 4294965248  ;;  %v45_v0 = vld [vmem:[#allocation5] sm:$0xff]  ;;  %v46_v1 = vld [vmem:[#allocation5 + $0x8] sm:$0xff]  ;;  %s330_s11 = smov [#allocation7]  }
  0x27   :  { %v47_v2 = vld [vmem:[#allocation5 + $0x10] sm:$0xff]  ;;  %v217_v3 = vpack.c.bf16 %v46_v1, %v45_v0  ;;  %v48_v4 = vld [vmem:[#allocation5 + $0x18] sm:$0xff]  ;;  %v49_v7 = vld [vmem:[#allocation5 + $0x20] sm:$0xff]  ;;  %s150_s12 = sshll.u32 %s330_s11, 4  ;;  %s151_s12 = int_to_ptr.vmem [resolvable:$true] %s150_s12 }
  0x28   :  { %v221_v5 = vpack.c.bf16 %v48_v4, %v47_v2  ;;  %v43_v6 = vld [vmem:[#allocation2] sm:$0xff]  ;;  %v50_v8 = vld [vmem:[#allocation5 + $0x28] sm:$0xff]  ;;  %v52_v11 = vld [vmem:[#allocation5 + $0x38] sm:$0xff]  ;;  %s298_s13 = scalar_lea.vmem %s151_s12, 256  ;;  %p303_p3 = scmp.lt.s32.totalorder %s151_s12, %s151_s12 }
  0x29   :  { %218 = vmatprep.subr.bf16.mxu0 %v217_v3  ;;  %214 = vmatprep.mubr.f32.mxu0 %v43_v6  ;;  %v225_v9 = vpack.c.bf16 %v50_v8, %v49_v7  ;;  %v51_v10 = vld [vmem:[#allocation5 + $0x30] sm:$0xff]  ;;  %v53_v13 = vld [vmem:[#allocation5 + $0x40] sm:$0xff]  ;;  %v54_v14 = vld [vmem:[#allocation5 + $0x48] sm:$0xff]  ;;  %p299_p2 = scmp.ne.s32.totalorder %s151_s12, %s298_s13  ;;  %p304_p4 = scmp.lt.s32.totalorder %s298_s13, %s298_s13 }
  0x2a   :  { %220 = vmatpush3.bf16.xpose.msra.mxu0 %v217_v3  ;;  %v229_v12 = vpack.c.bf16 %v52_v11, %v51_v10  ;;  %v233_v15 = vpack.c.bf16 %v54_v14, %v53_v13  ;;  %v55_v16 = vld [vmem:[#allocation5 + $0x50] sm:$0xff]  ;;  %v56_v17 = vld [vmem:[#allocation5 + $0x58] sm:$0xff]  ;;  %v57_v19 = vld [vmem:[#allocation5 + $0x60] sm:$0xff] }
  0x2b   :  { %222 = vmatprep.subr.bf16.mxu0 %v221_v5  ;;  %v237_v18 = vpack.c.bf16 %v56_v17, %v55_v16  ;;  %v58_v20 = vld [vmem:[#allocation5 + $0x68] sm:$0xff]  ;;  %v59_v22 = vld [vmem:[#allocation5 + $0x70] sm:$0xff]  ;;  %v60_v23 = vld [vmem:[#allocation5 + $0x78] sm:$0xff]  ;;  %p305_p5 = por %p304_p4, %p303_p3 }
  0x2c   :  { %v241_v21 = vpack.c.bf16 %v58_v20, %v57_v19  ;;  %v245_v24 = vpack.c.bf16 %v60_v23, %v59_v22  ;;  %v44_v25 = vld [vmem:[#allocation2 + $0x8] sm:$0xff]  ;;  %v163_v26 = vld [vmem:[%s401_s2] ss:$0 sm:$0xff] }
  0x2d   :  { %p306_p6 = pnand %p305_p5, %p299_p2 }
  0x32   :  { %224 = vmatpush3.bf16.xpose.msra.mxu0 %v221_v5 }
  0x33   :  { %226 = vmatprep.subr.bf16.mxu0 %v225_v9 }
  0x3a   :  { %228 = vmatpush3.bf16.xpose.msra.mxu0 %v225_v9 }
  0x3b   :  { %230 = vmatprep.subr.bf16.mxu0 %v229_v12 }
  0x42   :  { %232 = vmatpush3.bf16.xpose.msra.mxu0 %v229_v12 }
  0x43   :  { %234 = vmatprep.subr.bf16.mxu0 %v233_v15 }
  0x4a   :  { %236 = vmatpush3.bf16.xpose.msra.mxu0 %v233_v15 }
  0x4b   :  { %238 = vmatprep.subr.bf16.mxu0 %v237_v18 }
  0x52   :  { %240 = vmatpush3.bf16.xpose.msra.mxu0 %v237_v18 }
  0x53   :  { %242 = vmatprep.subr.bf16.mxu0 %v241_v21 }
  0x5a   :  { %244 = vmatpush3.bf16.xpose.msra.mxu0 %v241_v21 }
  0x5b   :  { %246 = vmatprep.subr.bf16.mxu0 %v245_v24 }
  0x62   :  { %248 = vmatpush3.bf16.xpose.msra.mxu0 %v245_v24 }
  0x69   :  { %215 = vmatmul.mubr.f32.vlgmr.msra.gmra.mrb[0].mxu0 %v44_v25 }
 0x13c   :  { %v216_v27 = vpop.f32.mrb[0].mxu0 }
 0x13d   :  { %v140_v28 = vadd.f32 %v216_v27, %v163_v26  ;;  %v134_v29 = vpop.f32.mrb[1].mxu0 }
 0x13e   :  { %v135_v30 = vadd.f32 %v163_v26, %v134_v29 }
 0x13f   :  { %144 = vst [vmem:[#allocation7 + $0x8] sm:$0xff] %v140_v28 }
 0x140   :  { %143 = vst [vmem:[#allocation7] sm:$0xff] %v135_v30 }
 0x141   :  { %309 = shalt.err (!%p306_p6)
}
 0x142   :  { %s310_s2 = scalar_lea.hbm %s402_s3, 256 }
 0x143   :  { %p311_p7 = scmp.ne.s32.totalorder %s402_s3, %s310_s2  ;;  %p314_p8 = scmp.lt.u32.totalorder %s310_s2, %s402_s3 }
 0x145   :  { %p316_p9 = pnand %p314_p8, %p311_p7 }
 0x147   :  { %319 = shalt.err (!%p316_p9)
}
 0x148   :  { %156 = dma.vmem_to_hbm [thread:$0]  %s151_s12, 256, %s402_s3, [#allocation4], %s327_s22, %s327_s22, %s328_s23  }
 0x149   :  { %324 = dma.done.wait [#allocation4], 256  }
 0x14a   :  { %325 = vsyncadd [#allocation4], 4294967040 }
 0x14b   :  { %160 = vsyncpa [#allocation3], 1 }
 0x14c   :  { %161 = vsyncpa [#allocation6], 1 }
 0x14d   :  { %162 = vsyncpa [#allocation4], 1 }

</bundles_post_ra>
